<compile_context>
chip_gen: v7x
topology: tpu7x:2x2x1
jax: 0.10.0
libtpu: 0.0.40
codegen_flags: <defaults>
</compile_context>

<pallas_src>
import math
import numpy as np
import jax
import jax.numpy as jnp
from jax.experimental import pallas as pl
from jax.experimental.pallas import tpu as pltpu


# ----------------------------- Pallas kernel -------------------------------
def _u_unfolding_kernel(ar_ref, ai_ref, hr_ref, hi_ref, pr_ref, pi_ref,
                        xbd_ref, z_ref, o_ref, mask_ref, out_ref):
    f32 = jnp.float32

    # --- element-wise complex reciprocal of A (cdiv) for ALL users at once ---
    a_r = ar_ref[...]                              # (K*M, M)  user-major row blocks
    a_i = ai_ref[...]
    # exact reciprocal (approx=True's ~12-bit EUP recip could fail 1e-4 after 3 matmuls)
    inv = pl.reciprocal(a_r * a_r + a_i * a_i, approx=False)
    d_r = a_r * inv                                # Re(1/a)
    d_ni = a_i * inv                               # -Im(1/a)
    # stacked real block-forms of cdiv(A_i): rows [top_all ; bot_all]  -> (2*K*M, 2M)
    d_all = jnp.concatenate(
        [jnp.concatenate([d_r, -d_ni], axis=1),    # [ Dr | Di ]
         jnp.concatenate([d_ni, d_r], axis=1)],    # [-Di | Dr ]
        axis=0)

    # --- stage 1: A_inv_i = X_i @ cdiv(A_i) + Z_i, all users in ONE dot (ctr = 2KM) ---
    a_inv = jnp.dot(xbd_ref[...], d_all, preferred_element_type=f32) + z_ref[...]  # (KM, 2M)

    # --- stage 2: T_i = A_inv_i @ Hbar_i via cross product + diagonal-block mask ---
    h_r = hr_ref[...]                              # (M, K*M) = [Hr_0|Hr_1|...]
    h_i = hi_ref[...]
    h_all = jnp.concatenate(
        [jnp.concatenate([h_r, h_i], axis=1),      # (M, 2KM)
         jnp.concatenate([-h_i, h_r], axis=1)],
        axis=0)                                    # (2M, 2KM)
    # Cross[rows_i, cols_j] = cmul(A_inv_i, Hbar_j); mask keeps only j == i blocks.
    t_bd = jnp.dot(a_inv, h_all, preferred_element_type=f32) * mask_ref[...]       # (KM, 2KM)

    # --- stage 3: U_i = T_i @ P_i + O_i, all users in ONE dot (ctr = 2KM) ---
    p_r = pr_ref[...]                              # (K*M, N)  user-major row blocks
    p_i = pi_ref[...]
    p_stack = jnp.concatenate(
        [jnp.concatenate([p_r, p_i], axis=1),      # [ Pr | Pi ]
         jnp.concatenate([-p_i, p_r], axis=1)],    # [-Pi | Pr ]
        axis=0)                                    # (2KM, 2N)
    out_ref[...] = jnp.dot(t_bd, p_stack, preferred_element_type=f32) + o_ref[...]


def u_unfolding_pallas(ar, ai, hr, hi, pr, pi, x_bd, z_st, o_st, mask):
    """All inputs already in kernel (lane/sublane-dense) layout. Output (K*M, 2N)."""
    KM, twoN = o_st.shape
    M = ar.shape[1]
    twoKM = 2 * KM
    vmem = pltpu.MemorySpace.VMEM
    inputs = (ar, ai, hr, hi, pr, pi, x_bd, z_st, o_st, mask)

    flops = 2 * (KM * twoKM * 2 * M       # stage 1
                 + KM * 2 * M * twoKM     # stage 2
                 + KM * twoKM * twoN)     # stage 3
    bytes_accessed = sum(int(np.prod(a.shape)) * 4 for a in inputs) + KM * twoN * 4

    return pl.pallas_call(
        _u_unfolding_kernel,
        out_shape=jax.ShapeDtypeStruct((KM, twoN), jnp.float32),
        in_specs=[pl.BlockSpec(memory_space=vmem)] * len(inputs),
        out_specs=pl.BlockSpec(memory_space=vmem),
        compiler_params=pltpu.CompilerParams(
            # let the wrapper's tiny layout transposes of A/Hbar/P fuse into the call;
            # cached params/mask come straight from HBM (nothing to fuse).
            allow_input_fusion=[True] * 6 + [False] * 4),
        cost_estimate=pl.CostEstimate(flops=flops, transcendentals=0,
                                      bytes_accessed=bytes_accessed),
    )(*inputs)


# --------------------------- jitted forward pass ----------------------------
@jax.jit
def _forward(A, Hbar, P, x_bd, z_st, o_st, mask):
    # torch layout: A, Hbar (2, M, M, K); P (2, M, N, K)
    M = A.shape[1]
    K = A.shape[-1]
    N = P.shape[2]
    # pure layout plumbing into lane/sublane-dense slabs (fused into the Mosaic call)
    ar = jnp.transpose(A[0], (2, 0, 1)).reshape(K * M, M)
    ai = jnp.transpose(A[1], (2, 0, 1)).reshape(K * M, M)
    hr = jnp.transpose(Hbar[0], (0, 2, 1)).reshape(M, K * M)
    hi = jnp.transpose(Hbar[1], (0, 2, 1)).reshape(M, K * M)
    pr = jnp.transpose(P[0], (2, 0, 1)).reshape(K * M, N)
    pi = jnp.transpose(P[1], (2, 0, 1)).reshape(K * M, N)
    u_stack = u_unfolding_pallas(ar, ai, hr, hi, pr, pi, x_bd, z_st, o_st, mask)
    # (K*M, 2N) -> torch layout (2, M, N, K)
    return jnp.transpose(u_stack.reshape(K, M, 2, N), (2, 1, 3, 0))


# --------------------------- module-level wrapper ---------------------------
def xavier_uniform(key, shape, gain):
    # matches torch.nn.init.xavier_uniform_ fan computation for >2-D tensors
    receptive = int(np.prod(shape[2:])) if len(shape) > 2 else 1
    fan_in = shape[1] * receptive
    fan_out = shape[0] * receptive
    bound = gain * math.sqrt(6.0 / (fan_in + fan_out))
    return jax.random.uniform(key, shape, jnp.float32, -bound, bound)


class UUnfoldingPallas:
    """JAX/Pallas port of U_unfolding. PyTorch layouts:
       A, Hbar: (2, M, M, K)   P: (2, M, N, K)   ->   U: (2, M, N, K)"""

    def __init__(self, M, N, num_users, key):
        power = 0.01
        self.M, self.N, self.K = M, N, num_users
        K = num_users
        keys = jax.random.split(key, 3 * K)
        # raw stacked params, user-major. params2/Y exists in the torch module but is
        # unused by U_unfolding.forward, so it is not allocated here.
        self.X = jnp.stack([xavier_uniform(keys[3 * i + 0], (2, M, M), power) for i in range(K)])
        self.Z = jnp.stack([xavier_uniform(keys[3 * i + 1], (2, M, M), power) for i in range(K)])
        self.O = jnp.stack([xavier_uniform(keys[3 * i + 2], (2, M, N), power) for i in range(K)])

        # -------- one-time packing into kernel layout (zero per-call cost) --------
        # X block-diagonal (K*M, 2*K*M): real blocks in left half, imag blocks in right
        # half, matching D_all = [top_all ; bot_all] row stacking inside the kernel.
        X_np = np.asarray(self.X, dtype=np.float32)
        x_bd = np.zeros((K * M, 2 * K * M), np.float32)
        for i in range(K):
            x_bd[i * M:(i + 1) * M, i * M:(i + 1) * M] = X_np[i, 0]
            x_bd[i * M:(i + 1) * M, K * M + i * M:K * M + (i + 1) * M] = X_np[i, 1]
        self.X_bd = jnp.asarray(x_bd)

        # Z_stack (K*M, 2M), O_stack (K*M, 2N): user-major row blocks of [Re | Im]
        self.Z_stack = jnp.concatenate([self.Z[:, 0], self.Z[:, 1]], axis=-1).reshape(K * M, 2 * M)
        self.O_stack = jnp.concatenate([self.O[:, 0], self.O[:, 1]], axis=-1).reshape(K * M, 2 * N)

        # diagonal-block selection mask for stage 2 (precomputed constant; no stale VMEM)
        r = np.arange(K * M)[:, None] // M
        c = (np.arange(2 * K * M)[None, :] % (K * M)) // M
        self.mask = jnp.asarray((r == c).astype(np.float32))

    def __call__(self, A, Hbar, P):
        return _forward(A, Hbar, P, self.X_bd, self.Z_stack, self.O_stack, self.mask)


# ------------------------------ reference ----------------------------------
def _cmul_ref(a, b):
    r = a[0] @ b[0] - a[1] @ b[1]
    i = a[0] @ b[1] + a[1] @ b[0]
    return jnp.stack([r, i])


def _cdiv_ref(a):
    d = a[0] * a[0] + a[1] * a[1]
    return jnp.stack([a[0] / d, -a[1] / d])


def u_unfolding_ref(A, Hbar, P, X, Z, O):
    K = A.shape[-1]
    outs = []
    for i in range(K):
        a_inv = _cmul_ref(X[i], _cdiv_ref(A[..., i])) + Z[i]
        u = _cmul_ref(_cmul_ref(a_inv, Hbar[..., i]), P[..., i]) + O[i]
        outs.append(u)
    return jnp.stack(outs, axis=-1)


# -------------------------------- main --------------------------------------
if __name__ == "__main__":
    M, N, num_users = 16, 8, 4
    key = jax.random.PRNGKey(0)
    k_param, k_a, k_h, k_p = jax.random.split(key, 4)

    model = UUnfoldingPallas(M, N, num_users, k_param)

    A = jax.random.normal(k_a, (2, M, M, num_users), jnp.float32)
    Hbar = jax.random.normal(k_h, (2, M, M, num_users), jnp.float32)
    P = jax.random.normal(k_p, (2, M, N, num_users), jnp.float32)

    U = jax.block_until_ready(model(A, Hbar, P))

    U_ref = u_unfolding_ref(A, Hbar, P, model.X, model.Z, model.O)
    np.testing.assert_allclose(np.asarray(U), np.asarray(U_ref),
                               rtol=1e-4, atol=1e-4)
    assert U.shape == (2, M, N, num_users)
    print("KERNEL_OK")
</pallas_src>

<mosaic_0001>
module attributes {stable_mosaic.version = 11 : i64} {
  func.func @_u_unfolding_kernel(%arg0: memref<64x16xf32, #tpu.memory_space<vmem>>, %arg1: memref<64x16xf32, #tpu.memory_space<vmem>>, %arg2: memref<16x64xf32, #tpu.memory_space<vmem>>, %arg3: memref<16x64xf32, #tpu.memory_space<vmem>>, %arg4: memref<64x8xf32, #tpu.memory_space<vmem>>, %arg5: memref<64x8xf32, #tpu.memory_space<vmem>>, %arg6: memref<64x128xf32, #tpu.memory_space<vmem>>, %arg7: memref<64x32xf32, #tpu.memory_space<vmem>>, %arg8: memref<64x16xf32, #tpu.memory_space<vmem>>, %arg9: memref<64x128xf32, #tpu.memory_space<vmem>>, %arg10: memref<64x16xf32, #tpu.memory_space<vmem>>) attributes {dimension_semantics = [], scalar_prefetch = 0 : i64, scratch_operands = 0 : i64, tpu.core_type = #tpu.core_type<tc>} {
    %c0 = arith.constant 0 : index
    %c0_0 = arith.constant 0 : index
    %0 = vector.load %arg0[%c0, %c0_0] : memref<64x16xf32, #tpu.memory_space<vmem>>, vector<64x16xf32>
    %c0_1 = arith.constant 0 : index
    %c0_2 = arith.constant 0 : index
    %1 = vector.load %arg1[%c0_1, %c0_2] : memref<64x16xf32, #tpu.memory_space<vmem>>, vector<64x16xf32>
    %2 = arith.mulf %0, %0 : vector<64x16xf32>
    %3 = arith.mulf %1, %1 : vector<64x16xf32>
    %4 = arith.addf %2, %3 : vector<64x16xf32>
    %5 = tpu.reciprocal %4 : vector<64x16xf32> -> vector<64x16xf32>
    %6 = arith.mulf %0, %5 : vector<64x16xf32>
    %7 = arith.mulf %1, %5 : vector<64x16xf32>
    %cst = arith.constant 0.000000e+00 : f32
    %8 = vector.broadcast %cst : f32 to vector<64x16xf32>
    %9 = arith.subf %8, %7 : vector<64x16xf32>
    %10 = tpu.concatenate %6, %9 in 1 : vector<64x16xf32>, vector<64x16xf32> -> vector<64x32xf32>
    %11 = tpu.concatenate %7, %6 in 1 : vector<64x16xf32>, vector<64x16xf32> -> vector<64x32xf32>
    %12 = tpu.concatenate %10, %11 in 0 : vector<64x32xf32>, vector<64x32xf32> -> vector<128x32xf32>
    %c0_3 = arith.constant 0 : index
    %c0_4 = arith.constant 0 : index
    %13 = vector.load %arg6[%c0_3, %c0_4] : memref<64x128xf32, #tpu.memory_space<vmem>>, vector<64x128xf32>
    %cst_5 = arith.constant dense<0.000000e+00> : vector<64x32xf32>
    %14 = tpu.matmul %13, %12, %cst_5 {dimension_numbers = #tpu.dot_dimension_numbers<[1], [0], [0], [1], [0, 0, 1, 1], [], []>} : vector<64x128xf32>, vector<128x32xf32>, vector<64x32xf32> -> vector<64x32xf32>
    %c0_6 = arith.constant 0 : index
    %c0_7 = arith.constant 0 : index
    %15 = vector.load %arg7[%c0_6, %c0_7] : memref<64x32xf32, #tpu.memory_space<vmem>>, vector<64x32xf32>
    %16 = arith.addf %14, %15 : vector<64x32xf32>
    %c0_8 = arith.constant 0 : index
    %c0_9 = arith.constant 0 : index
    %17 = vector.load %arg2[%c0_8, %c0_9] : memref<16x64xf32, #tpu.memory_space<vmem>>, vector<16x64xf32>
    %c0_10 = arith.constant 0 : index
    %c0_11 = arith.constant 0 : index
    %18 = vector.load %arg3[%c0_10, %c0_11] : memref<16x64xf32, #tpu.memory_space<vmem>>, vector<16x64xf32>
    %19 = tpu.concatenate %17, %18 in 1 : vector<16x64xf32>, vector<16x64xf32> -> vector<16x128xf32>
    %cst_12 = arith.constant 0.000000e+00 : f32
    %20 = vector.broadcast %cst_12 : f32 to vector<16x64xf32>
    %21 = arith.subf %20, %18 : vector<16x64xf32>
    %22 = tpu.concatenate %21, %17 in 1 : vector<16x64xf32>, vector<16x64xf32> -> vector<16x128xf32>
    %23 = tpu.concatenate %19, %22 in 0 : vector<16x128xf32>, vector<16x128xf32> -> vector<32x128xf32>
    %cst_13 = arith.constant dense<0.000000e+00> : vector<64x128xf32>
    %24 = tpu.matmul %16, %23, %cst_13 {dimension_numbers = #tpu.dot_dimension_numbers<[1], [0], [0], [1], [0, 0, 1, 1], [], []>} : vector<64x32xf32>, vector<32x128xf32>, vector<64x128xf32> -> vector<64x128xf32>
    %c0_14 = arith.constant 0 : index
    %c0_15 = arith.constant 0 : index
    %25 = vector.load %arg9[%c0_14, %c0_15] : memref<64x128xf32, #tpu.memory_space<vmem>>, vector<64x128xf32>
    %26 = arith.mulf %24, %25 : vector<64x128xf32>
    %c0_16 = arith.constant 0 : index
    %c0_17 = arith.constant 0 : index
    %27 = vector.load %arg4[%c0_16, %c0_17] : memref<64x8xf32, #tpu.memory_space<vmem>>, vector<64x8xf32>
    %c0_18 = arith.constant 0 : index
    %c0_19 = arith.constant 0 : index
    %28 = vector.load %arg5[%c0_18, %c0_19] : memref<64x8xf32, #tpu.memory_space<vmem>>, vector<64x8xf32>
    %29 = tpu.concatenate %27, %28 in 1 : vector<64x8xf32>, vector<64x8xf32> -> vector<64x16xf32>
    %cst_20 = arith.constant 0.000000e+00 : f32
    %30 = vector.broadcast %cst_20 : f32 to vector<64x8xf32>
    %31 = arith.subf %30, %28 : vector<64x8xf32>
    %32 = tpu.concatenate %31, %27 in 1 : vector<64x8xf32>, vector<64x8xf32> -> vector<64x16xf32>
    %33 = tpu.concatenate %29, %32 in 0 : vector<64x16xf32>, vector<64x16xf32> -> vector<128x16xf32>
    %cst_21 = arith.constant dense<0.000000e+00> : vector<64x16xf32>
    %34 = tpu.matmul %26, %33, %cst_21 {dimension_numbers = #tpu.dot_dimension_numbers<[1], [0], [0], [1], [0, 0, 1, 1], [], []>} : vector<64x128xf32>, vector<128x16xf32>, vector<64x16xf32> -> vector<64x16xf32>
    %c0_22 = arith.constant 0 : index
    %c0_23 = arith.constant 0 : index
    %35 = vector.load %arg8[%c0_22, %c0_23] : memref<64x16xf32, #tpu.memory_space<vmem>>, vector<64x16xf32>
    %36 = arith.addf %34, %35 : vector<64x16xf32>
    %c0_24 = arith.constant 0 : index
    %c0_25 = arith.constant 0 : index
    %37 = vector.load %arg10[%c0_24, %c0_25] : memref<64x16xf32, #tpu.memory_space<vmem>>, vector<64x16xf32>
    tpu.vector_store %arg10[%c0_24, %c0_25], %36 {strides = array<i32>} : memref<64x16xf32, #tpu.memory_space<vmem>>, vector<64x16xf32>,
    return
  }
}

</mosaic_0001>

<bundles_post_ra>
// kernel: _forward.1
= control target key start
LH: loop header
LB: loop body
LE: loop exit
PB: predicated region body
PF: predicated region fallthrough
CT: control target
= control target key end

     0   :  { %s1070_s14 = smov 64   ;;  %vm139_vm0 = vcmask 130048   ;;  %vm321_vm1 = vcmask 523264   ;;  %s1071_s18 = smov 8   ;;  %vm336_vm2 = vcmask 261120   ;;  %vm530_vm3 = vcmask 64512   ;;  %s1543_s0 = inlined_call_operand.vmem [shape: f32[64,16], index: 0, kind: input, shape index: {}]   ;;  %s1544_s1 = inlined_call_operand.vmem [shape: f32[64,16], index: 1, kind: input, shape index: {}]   ;;  %s1545_s6 = inlined_call_operand.vmem [shape: f32[64,128], index: 6, kind: input, shape index: {}]   ;;  %s1546_s3 = inlined_call_operand.vmem [shape: f32[16,64], index: 3, kind: input, shape index: {}]   ;;  %s1547_s2 = inlined_call_operand.vmem [shape: f32[16,64], index: 2, kind: input, shape index: {}]   ;;  %s1548_s5 = inlined_call_operand.vmem [shape: f32[64,8], index: 5, kind: input, shape index: {}]   ;;  %s1549_s4 = inlined_call_operand.vmem [shape: f32[64,8], index: 4, kind: input, shape index: {}]   ;;  %s1550_s7 = inlined_call_operand.vmem [shape: f32[64,32], index: 7, kind: input, shape index: {}]   ;;  %s1551_s9 = inlined_call_operand.vmem [shape: f32[64,128], index: 9, kind: input, shape index: {}]   ;;  %s1552_s8 = inlined_call_operand.vmem [shape: f32[64,16], index: 8, kind: input, shape index: {}]   ;;  %s1553_s10 = inlined_call_operand.vmem [shape: f32[64,16], index: 10, kind: output, shape index: {}]  }
   0x1   :  { %v1130_v0 = vld [vmem:[%s1543_s0] sm:$0xff]  ;;  %v1135_v1 = vld [vmem:[%s1543_s0 + $0x8] sm:$0xff]  ;;  %v1150_v7 = vld [vmem:[%s1543_s0 + $0x10] sm:$0xff] }
   0x2   :  { %v43_v2 = vld [vmem:[%s1544_s1] sm:$0xff]  ;;  %v44_v3 = vld [vmem:[%s1544_s1 + $0x8] sm:$0xff]  ;;  %v51_v4 = vmul.f32 %v1130_v0, %v1130_v0  ;;  %v52_v5 = vmul.f32 %v1135_v1, %v1135_v1  ;;  %v1155_v8 = vld [vmem:[%s1543_s0 + $0x18] sm:$0xff]  ;;  %v53_v12 = vmul.f32 %v1150_v7, %v1150_v7 }
   0x3   :  { %v59_v6 = vmul.f32 %v43_v2, %v43_v2  ;;  %v60_v9 = vmul.f32 %v44_v3, %v44_v3  ;;  %v45_v10 = vld [vmem:[%s1544_s1 + $0x10] sm:$0xff]  ;;  %v46_v11 = vld [vmem:[%s1544_s1 + $0x18] sm:$0xff]  ;;  %v54_v13 = vmul.f32 %v1155_v8, %v1155_v8  ;;  %v1170_v14 = vld [vmem:[%s1543_s0 + $0x20] sm:$0xff] }
   0x4   :  { %v61_v16 = vmul.f32 %v45_v10, %v45_v10  ;;  %v62_v17 = vmul.f32 %v46_v11, %v46_v11  ;;  %v1175_v18 = vld [vmem:[%s1543_s0 + $0x28] sm:$0xff]  ;;  %v47_v19 = vld [vmem:[%s1544_s1 + $0x20] sm:$0xff]  ;;  %v55_v21 = vmul.f32 %v1170_v14, %v1170_v14  ;;  %v1190_v26 = vld [vmem:[%s1543_s0 + $0x30] sm:$0xff] }
   0x5   :  { %v67_v15 = vadd.f32 %v59_v6, %v51_v4  ;;  %v48_v20 = vld [vmem:[%s1544_s1 + $0x28] sm:$0xff]  ;;  %v68_v22 = vadd.f32 %v60_v9, %v52_v5  ;;  %v56_v23 = vmul.f32 %v1175_v18, %v1175_v18  ;;  %v63_v24 = vmul.f32 %v47_v19, %v47_v19  ;;  %v1195_v27 = vld [vmem:[%s1543_s0 + $0x38] sm:$0xff]  ;;  %v49_v28 = vld [vmem:[%s1544_s1 + $0x30] sm:$0xff]  ;;  %s1069_s0 = smov 16  }
   0x6   :  { %v64_v25 = vmul.f32 %v48_v20, %v48_v20  ;;  %v69_v29 = vadd.f32 %v61_v16, %v53_v12  ;;  %v70_v30 = vadd.f32 %v62_v17, %v54_v13  ;;  %v50_v31 = vld [vmem:[%s1544_s1 + $0x38] sm:$0xff]  ;;  %v57_v32 = vmul.f32 %v1190_v26, %v1190_v26 }
   0x7   :  { %1053 = vrcp.f32 %v67_v15  ;;  %v71_v33 = vadd.f32 %v63_v24, %v55_v21  ;;  %v58_v35 = vmul.f32 %v1195_v27, %v1195_v27  ;;  %v65_v36 = vmul.f32 %v49_v28, %v49_v28  ;;  %v1262_v21 = vld [vmem:[%s1547_s2 + $0x8] sm:$0xff] }
   0x8   :  { %1055 = vrcp.f32 %v68_v22  ;;  %v72_v34 = vadd.f32 %v64_v25, %v56_v23  ;;  %v66_v37 = vmul.f32 %v50_v31, %v50_v31 }
   0x9   :  { %1057 = vrcp.f32 %v69_v29  ;;  %v73_v38 = vadd.f32 %v65_v36, %v57_v32 }
   0xa   :  { %1059 = vrcp.f32 %v70_v30  ;;  %v74_v39 = vadd.f32 %v66_v37, %v58_v35 }
   0xb   :  { %1061 = vrcp.f32 %v71_v33 }
   0xc   :  { %1063 = vrcp.f32 %v72_v34 }
   0xd   :  { %1065 = vrcp.f32 %v73_v38 }
   0xe   :  { %1067 = vrcp.f32 %v74_v39 }
  0x11   :  { %v1054_v40 = vpop.eup %1053 }
  0x12   :  { %v1056_v41 = vpop.eup %1055  ;;  %v1207_v42 = vmul.f32 %v1054_v40, %v43_v2  ;;  %v83_v61 = vmul.f32 %v1054_v40, %v1130_v0 }
  0x13   :  { %v1058_v43 = vpop.eup %1057  ;;  %v1209_v44 = vmul.f32 %v1056_v41, %v44_v3  ;;  %v84_v62 = vmul.f32 %v1056_v41, %v1135_v1 }
  0x14   :  { %v1060_v45 = vpop.eup %1059  ;;  %v99_v46 = vsub.f32 0.0, %v1207_v42  ;;  %v1212_v47 = vmul.f32 %v1058_v43, %v45_v10  ;;  %v85_v10 = vmul.f32 %v1058_v43, %v1150_v7 }
  0x15   :  { %v1062_v48 = vpop.eup %1061  ;;  %v100_v49 = vsub.f32 0.0, %v1209_v44  ;;  %v1215_v50 = vmul.f32 %v1060_v45, %v46_v11  ;;  %v983_v9 = vpack.i.bf16 %v84_v62, %v83_v61  ;;  %v86_v11 = vmul.f32 %v1060_v45, %v1155_v8  ;;  %v188_v8 = vld [vmem:[%s1545_s6] sm:$0xff] }
  0x16   :  { %v1064_v51 = vpop.eup %1063  ;;  %v101_v52 = vsub.f32 0.0, %v1212_v47  ;;  %v1218_v53 = vmul.f32 %v1062_v48, %v47_v19  ;;  %v87_v1 = vmul.f32 %v1062_v48, %v1170_v14  ;;  %812 = vmatprep.mubr.f32.mxu0 %v188_v8  ;;  %v1245_v14 = vld [vmem:[%s1546_s3] sm:$0xff] }
  0x17   :  { %v1066_v54 = vpop.eup %1065  ;;  %v963_v55 = vpack.i.bf16 %v100_v49, %v99_v46  ;;  %v102_v56 = vsub.f32 0.0, %v1215_v50  ;;  %v1221_v57 = vmul.f32 %v1064_v51, %v48_v20  ;;  %v88_v12 = vmul.f32 %v1064_v51, %v1175_v18  ;;  %v1250_v18 = vld [vmem:[%s1546_s3 + $0x8] sm:$0xff]  ;;  %v1255_v19 = vld [vmem:[%s1547_s2] sm:$0xff] }
  0x18   :  { %v1068_v58 = vpop.eup %1067  ;;  %v103_v59 = vsub.f32 0.0, %v1218_v53  ;;  %v1224_v60 = vmul.f32 %v1066_v54, %v49_v28  ;;  %v988_v13 = vpack.i.bf16 %v86_v11, %v85_v10  ;;  %v89_v16 = vmul.f32 %v1066_v54, %v1190_v26 }
  0x19   :  { %964 = vrot.lane.b32.xlu0 %v963_v55, %s1069_s0  ;;  %v968_v63 = vpack.i.bf16 %v102_v56, %v101_v52  ;;  %v104_v2 = vsub.f32 0.0, %v1221_v57  ;;  %v1229_v3 = vmul.f32 %v1068_v58, %v50_v31  ;;  %v993_v15 = vpack.i.bf16 %v88_v12, %v87_v1 }
  0x1a   :  { %v105_v4 = vsub.f32 0.0, %v1224_v60  ;;  %v90_v17 = vmul.f32 %v1068_v58, %v1195_v27  ;;  %v1003_v20 = vpack.i.bf16 %v1250_v18, %v1245_v14  ;;  %v1008_v22 = vpack.i.bf16 %v1262_v21, %v1255_v19 }
  0x1b   :  { %v973_v5 = vpack.i.bf16 %v104_v2, %v103_v59  ;;  %v106_v6 = vsub.f32 0.0, %v1229_v3 }
  0x1c   :  { %v998_v7 = vpack.i.bf16 %v90_v17, %v89_v16 }
  0x1d   :  { %969 = vrot.lane.b32.xlu0 %v968_v63, %s1069_s0  ;;  %974 = vrot.lane.b32.xlu1 %v973_v5, %s1069_s0  ;;  %v978_v0 = vpack.i.bf16 %v106_v6, %v105_v4 }
  0x21   :  { %979 = vrot.lane.b32.xlu1 %v978_v0, %s1069_s0  ;;  %984 = vrot.lane.b32.xlu0 %v983_v9, %s1069_s0 }
  0x25   :  { %989 = vrot.lane.b32.xlu1 %v988_v13, %s1069_s0  ;;  %994 = vrot.lane.b32.xlu0 %v993_v15, %s1069_s0 }
  0x29   :  { %999 = vrot.lane.b32.xlu1 %v998_v7, %s1069_s0  ;;  %1004 = vrot.lane.b32.xlu0 %v1003_v20, %s1070_s14  ;;  %v194_v20 = vld [vmem:[%s1545_s6 + $0x30] sm:$0xff] }
  0x2d   :  { %1009 = vrot.lane.b32.xlu1 %v1008_v22, %s1070_s14 }
  0x8b   :  { %v965_v23 = vpop.permute.xlu0 %964 }
  0x8c   :  { %v967_v24 = vunpack.i.h.bf16 %v965_v23  ;;  %v966_v25 = vunpack.i.l.bf16 %v965_v23  ;;  %v195_v23 = vld [vmem:[%s1545_s6 + $0x38] sm:$0xff] }
  0x8e   :  { %v140_v26 = vsel %vm139_vm0, %v83_v61, %v966_v25  ;;  %v141_v27 = vsel %vm139_vm0, %v84_v62, %v967_v24  ;;  %v324_v25 = vsub.f32 0.0, %v1245_v14  ;;  %v1332_v14 = vld [vmem:[%s1548_s5 + $0x10] sm:$0xff] }
  0x8f   :  { %v970_v28 = vpop.permute.xlu0 %969  ;;  %v888_v29 = vpack.c.bf16 %v141_v27, %v140_v26  ;;  %v975_v30 = vpop.permute.xlu1 %974 }
  0x90   :  { %v972_v31 = vunpack.i.h.bf16 %v970_v28  ;;  %v971_v32 = vunpack.i.l.bf16 %v970_v28  ;;  %v977_v33 = vunpack.i.h.bf16 %v975_v30  ;;  %v976_v34 = vunpack.i.l.bf16 %v975_v30  ;;  %v1322_v30 = vld [vmem:[%s1548_s5] sm:$0xff] }
  0x91   :  { %889 = vmatprep.subr.bf16.mxu0 %v888_v29 }
  0x92   :  { %891 = vmatpush3.bf16.msra.mxu0 %v888_v29  ;;  %v142_v35 = vsel %vm139_vm0, %v85_v10, %v971_v32  ;;  %v143_v36 = vsel %vm139_vm0, %v86_v11, %v972_v31  ;;  %v144_v37 = vsel %vm139_vm0, %v87_v1, %v976_v34  ;;  %v145_v38 = vsel %vm139_vm0, %v88_v12, %v977_v33  ;;  %v1339_v32 = vld [vmem:[%s1548_s5 + $0x18] sm:$0xff]  ;;  %v1344_v33 = vld [vmem:[%s1548_s5 + $0x20] sm:$0xff]  ;;  %v1349_v34 = vld [vmem:[%s1548_s5 + $0x28] sm:$0xff] }
  0x93   :  { %v892_v39 = vpack.c.bf16 %v143_v36, %v142_v35  ;;  %v980_v40 = vpop.permute.xlu1 %979  ;;  %v896_v41 = vpack.c.bf16 %v145_v38, %v144_v37  ;;  %v985_v43 = vpop.permute.xlu0 %984  ;;  %v1018_v35 = vpack.i.bf16 %v1339_v32, %v1332_v14  ;;  %v1356_v36 = vld [vmem:[%s1548_s5 + $0x30] sm:$0xff]  ;;  %v1361_v37 = vld [vmem:[%s1548_s5 + $0x38] sm:$0xff]  ;;  %v1023_v38 = vpack.i.bf16 %v1349_v34, %v1344_v33 }
  0x94   :  { %v982_v45 = vunpack.i.h.bf16 %v980_v40  ;;  %v981_v46 = vunpack.i.l.bf16 %v980_v40  ;;  %v987_v48 = vunpack.i.h.bf16 %v985_v43  ;;  %v986_v49 = vunpack.i.l.bf16 %v985_v43  ;;  %v482_v40 = vld [vmem:[%s1549_s4] sm:$0xff]  ;;  %v484_v43 = vld [vmem:[%s1549_s4 + $0x10] sm:$0xff] }
  0x95   :  { %893 = vmatprep.subr.bf16.mxu0 %v892_v39  ;;  %1019 = vrot.lane.b32.xlu1 %v1018_v35, %s1071_s18 }
  0x96   :  { %895 = vmatpush3.bf16.msra.mxu0 %v892_v39  ;;  %v146_v51 = vsel %vm139_vm0, %v89_v16, %v981_v46  ;;  %v147_v52 = vsel %vm139_vm0, %v90_v17, %v982_v45  ;;  %v180_v59 = vsel %vm139_vm0, %v1207_v42, %v986_v49  ;;  %v181_v61 = vsel %vm139_vm0, %v1209_v44, %v987_v48  ;;  %v193_v17 = vld [vmem:[%s1545_s6 + $0x28] sm:$0xff]  ;;  %v485_v45 = vld [vmem:[%s1549_s4 + $0x18] sm:$0xff]  ;;  %v1382_v49 = vld [vmem:[%s1549_s4 + $0x20] sm:$0xff] }
  0x97   :  { %897 = vmatprep.subr.bf16.mxu0 %v896_v41  ;;  %v900_v54 = vpack.c.bf16 %v147_v52, %v146_v51  ;;  %v990_v55 = vpop.permute.xlu1 %989  ;;  %v995_v62 = vpop.permute.xlu0 %994  ;;  %v904_v63 = vpack.c.bf16 %v181_v61, %v180_v59  ;;  %v1028_v39 = vpack.i.bf16 %v1361_v37, %v1356_v36  ;;  %v1038_v48 = vpack.i.bf16 %v485_v45, %v484_v43  ;;  %v1387_v51 = vld [vmem:[%s1549_s4 + $0x28] sm:$0xff]  ;;  %v1392_v52 = vld [vmem:[%s1549_s4 + $0x30] sm:$0xff] }
  0x98   :  { %v992_v56 = vunpack.i.h.bf16 %v990_v55  ;;  %v991_v58 = vunpack.i.l.bf16 %v990_v55  ;;  %v997_v2 = vunpack.i.h.bf16 %v995_v62  ;;  %v996_v4 = vunpack.i.l.bf16 %v995_v62  ;;  %v197_v59 = vld [vmem:[%s1550_s7 + $0x8] sm:$0xff] }
  0x99   :  { %1029 = vrot.lane.b32.xlu1 %v1028_v39, %s1071_s18  ;;  %v1043_v55 = vpack.i.bf16 %v1387_v51, %v1382_v49 }
  0x9a   :  { %899 = vmatpush3.bf16.msra.mxu0 %v896_v41  ;;  %v182_v5 = vsel %vm139_vm0, %v1212_v47, %v991_v58  ;;  %v183_v6 = vsel %vm139_vm0, %v1215_v50, %v992_v56  ;;  %v184_v44 = vsel %vm139_vm0, %v1218_v53, %v996_v4  ;;  %v185_v0 = vsel %vm139_vm0, %v1221_v57, %v997_v2  ;;  %v189_v53 = vld [vmem:[%s1545_s6 + $0x8] sm:$0xff]  ;;  %v190_v57 = vld [vmem:[%s1545_s6 + $0x10] sm:$0xff]  ;;  %v196_v58 = vld [vmem:[%s1550_s7] sm:$0xff] }
  0x9b   :  { %901 = vmatprep.subr.bf16.mxu0 %v900_v54  ;;  %v1000_v9 = vpop.permute.xlu1 %999  ;;  %v908_v10 = vpack.c.bf16 %v183_v6, %v182_v5  ;;  %v912_v1 = vpack.c.bf16 %v185_v0, %v184_v44  ;;  %v1005_v13 = vpop.permute.xlu0 %1004  ;;  %v483_v41 = vld [vmem:[%s1549_s4 + $0x8] sm:$0xff]  ;;  %v198_v4 = vld [vmem:[%s1550_s7 + $0x10] sm:$0xff]  ;;  %v199_v5 = vld [vmem:[%s1550_s7 + $0x18] sm:$0xff] }
  0x9c   :  { %v1002_v42 = vunpack.i.h.bf16 %v1000_v9  ;;  %v1001_v11 = vunpack.i.l.bf16 %v1000_v9  ;;  %v1007_v15 = vunpack.i.h.bf16 %v1005_v13  ;;  %v1006_v16 = vunpack.i.l.bf16 %v1005_v13  ;;  %v201_v0 = vld [vmem:[%s1550_s7 + $0x28] sm:$0xff] }
  0x9d   :  { %v1033_v46 = vpack.i.bf16 %v483_v41, %v482_v40  ;;  %1039 = vrot.lane.b32.xlu1 %v1038_v48, %s1071_s18 }
  0x9e   :  { %903 = vmatpush3.bf16.msra.mxu0 %v900_v54  ;;  %v186_v47 = vsel %vm139_vm0, %v1224_v60, %v1001_v11  ;;  %v187_v50 = vsel %vm139_vm0, %v1229_v3, %v1002_v42  ;;  %v191_v60 = vld [vmem:[%s1545_s6 + $0x18] sm:$0xff]  ;;  %v192_v3 = vld [vmem:[%s1545_s6 + $0x20] sm:$0xff]  ;;  %v322_v7 = vsel %vm321_vm1, %v1255_v19, %v1006_v16  ;;  %v323_v8 = vsel %vm321_vm1, %v1262_v21, %v1007_v15 }
  0x9f   :  { %905 = vmatprep.subr.bf16.mxu0 %v904_v63  ;;  %v916_v12 = vpack.c.bf16 %v187_v50, %v186_v47  ;;  %v920_v22 = vpack.c.bf16 %v323_v8, %v322_v7  ;;  %v1010_v24 = vpop.permute.xlu1 %1009  ;;  %v325_v19 = vsub.f32 0.0, %v1250_v18  ;;  %v1327_v18 = vld [vmem:[%s1548_s5 + $0x8] sm:$0xff]  ;;  %v1397_v54 = vld [vmem:[%s1549_s4 + $0x38] sm:$0xff]  ;;  %v200_v11 = vld [vmem:[%s1550_s7 + $0x20] sm:$0xff] }
  0xa0   :  { %v1012_v21 = vunpack.i.h.bf16 %v1010_v24  ;;  %v1011_v26 = vunpack.i.l.bf16 %v1010_v24  ;;  %v1013_v31 = vpack.i.bf16 %v1327_v18, %v1322_v30  ;;  %v1048_v56 = vpack.i.bf16 %v1397_v54, %v1392_v52 }
  0xa1   :  { %921 = vmatprep.subr.bf16.mxu1 %v920_v22 }
  0xa2   :  { %907 = vmatpush3.bf16.msra.mxu0 %v904_v63  ;;  %923 = vmatpush3.bf16.msra.mxu1 %v920_v22  ;;  %v334_v27 = vsel %vm321_vm1, %v324_v25, %v1011_v26  ;;  %v335_v28 = vsel %vm321_vm1, %v325_v19, %v1012_v21 }
  0xa3   :  { %909 = vmatprep.subr.bf16.mxu0 %v908_v10  ;;  %v924_v29 = vpack.c.bf16 %v335_v28, %v334_v27  ;;  %1014 = vrot.lane.b32.xlu0 %v1013_v31, %s1071_s18  ;;  %v540_v28 = vsub.f32 0.0, %v1327_v18 }
  0xa4   :  { %1049 = vrot.lane.b32.xlu1 %v1048_v56, %s1071_s18 }
  0xa5   :  { %925 = vmatprep.subr.bf16.mxu1 %v924_v29 }
  0xa6   :  { %911 = vmatpush3.bf16.msra.mxu0 %v908_v10  ;;  %927 = vmatpush3.bf16.msra.mxu1 %v924_v29 }
  0xa7   :  { %913 = vmatprep.subr.bf16.mxu0 %v912_v1  ;;  %1024 = vrot.lane.b32.xlu0 %v1023_v38, %s1071_s18  ;;  %v539_v38 = vsub.f32 0.0, %v1322_v30 }
  0xaa   :  { %915 = vmatpush3.bf16.msra.mxu0 %v912_v1 }
  0xab   :  { %917 = vmatprep.subr.bf16.mxu0 %v916_v12  ;;  %1034 = vrot.lane.b32.xlu0 %v1033_v46, %s1071_s18 }
  0xae   :  { %919 = vmatpush3.bf16.msra.mxu0 %v916_v12 }
  0xaf   :  { %1044 = vrot.lane.b32.xlu0 %v1043_v55, %s1071_s18 }
  0xb1   :  { %813 = vmatmul.mubr.f32.vlgmr.msra.gmra.mrb[0].mxu0 %v189_v53 }
  0xb2   :  { %815 = vmatprep.mubr.f32.mxu0 %v190_v57 }
  0xb5   :  { %816 = vmatmul.mubr.f32.gmra.mrb[2].mxu0 %v191_v60 }
  0xb6   :  { %818 = vmatprep.mubr.f32.mxu0 %v192_v3 }
  0xb9   :  { %819 = vmatmul.mubr.f32.gmra.mrb[4].mxu0 %v193_v17  ;;  %v202_v17 = vld [vmem:[%s1550_s7 + $0x30] sm:$0xff] }
  0xba   :  { %821 = vmatprep.mubr.f32.mxu0 %v194_v20 }
  0xbd   :  { %822 = vmatmul.mubr.f32.gmra.mrb[6].mxu0 %v195_v23  ;;  %v203_v23 = vld [vmem:[%s1550_s7 + $0x38] sm:$0xff] }
 0x107   :  { %v1020_v12 = vpop.permute.xlu1 %1019 }
 0x108   :  { %v1022_v57 = vunpack.i.h.bf16 %v1020_v12  ;;  %v1021_v60 = vunpack.i.l.bf16 %v1020_v12  ;;  %v466_v12 = vld [vmem:[%s1551_s9] sm:$0xff] }
 0x10a   :  { %v533_v20 = vsel %vm530_vm3, %v484_v43, %v1021_v60  ;;  %v534_v22 = vsel %vm530_vm3, %v485_v45, %v1022_v57  ;;  %v542_v43 = vsub.f32 0.0, %v1339_v32  ;;  %v541_v45 = vsub.f32 0.0, %v1332_v14 }
 0x10b   :  { %v932_v21 = vpack.c.bf16 %v534_v22, %v533_v20  ;;  %v1030_v26 = vpop.permute.xlu1 %1029  ;;  %v544_v14 = vsub.f32 0.0, %v1349_v34  ;;  %v471_v22 = vld [vmem:[%s1551_s9 + $0x28] sm:$0xff] }
 0x10c   :  { %v1032_v29 = vunpack.i.h.bf16 %v1030_v26  ;;  %v1031_v31 = vunpack.i.l.bf16 %v1030_v26  ;;  %v473_v26 = vld [vmem:[%s1551_s9 + $0x38] sm:$0xff] }
 0x10e   :  { %v537_v30 = vsel %vm530_vm3, %v1392_v52, %v1031_v31  ;;  %v588_v31 = vld [vmem:[%s1552_s8 + $0x8] sm:$0xff] }
 0x10f   :  { %v1040_v56 = vpop.permute.xlu1 %1039 }
 0x110   :  { %v1041_v32 = vunpack.i.l.bf16 %v1040_v56 }
 0x115   :  { %v1015_v44 = vpop.permute.xlu0 %1014 }
 0x116   :  { %v1017_v47 = vunpack.i.h.bf16 %v1015_v44  ;;  %v1016_v50 = vunpack.i.l.bf16 %v1015_v44 }
 0x118   :  { %v531_v13 = vsel %vm530_vm3, %v482_v40, %v1016_v50  ;;  %v532_v15 = vsel %vm530_vm3, %v483_v41, %v1017_v47 }
 0x119   :  { %v928_v7 = vpack.c.bf16 %v532_v15, %v531_v13  ;;  %v1025_v8 = vpop.permute.xlu0 %1024  ;;  %v469_v15 = vld [vmem:[%s1551_s9 + $0x18] sm:$0xff] }
 0x11a   :  { %v1027_v19 = vunpack.i.h.bf16 %v1025_v8  ;;  %v1026_v25 = vunpack.i.l.bf16 %v1025_v8  ;;  %v470_v8 = vld [vmem:[%s1551_s9 + $0x20] sm:$0xff] }
 0x11b   :  { %929 = vmatprep.subr.bf16.mxu1 %v928_v7 }
 0x11c   :  { %v535_v39 = vsel %vm530_vm3, %v1382_v49, %v1026_v25  ;;  %v536_v40 = vsel %vm530_vm3, %v1387_v51, %v1027_v19  ;;  %v538_v49 = vsel %vm530_vm3, %v1397_v54, %v1032_v29  ;;  %v1042_v51 = vunpack.i.h.bf16 %v1040_v56  ;;  %v472_v25 = vld [vmem:[%s1551_s9 + $0x30] sm:$0xff] }
 0x11d   :  { %v936_v18 = vpack.c.bf16 %v536_v40, %v535_v39  ;;  %v1035_v46 = vpop.permute.xlu0 %1034  ;;  %v581_v54 = vsel %vm530_vm3, %v541_v45, %v1041_v32  ;;  %v589_v45 = vld [vmem:[%s1552_s8 + $0x10] sm:$0xff] }
 0x11e   :  { %v1037_v48 = vunpack.i.h.bf16 %v1035_v46  ;;  %v1036_v55 = vunpack.i.l.bf16 %v1035_v46 }
 0x184   :  { %v814_v61 = vpop.f32.mrb[0].mxu0 }
 0x185   :  { %v270_v62 = vpop.f32.mrb[1].mxu0  ;;  %v276_v2 = vadd.f32 %v814_v61, %v197_v59  ;;  %v579_v59 = vsel %vm530_vm3, %v539_v38, %v1036_v55  ;;  %v580_v61 = vsel %vm530_vm3, %v540_v28, %v1037_v48 }
 0x186   :  { %v271_v63 = vadd.f32 %v270_v62, %v196_v58  ;;  %v543_v58 = vsub.f32 0.0, %v1344_v33  ;;  %v940_v62 = vpack.c.bf16 %v538_v49, %v537_v30  ;;  %v944_v52 = vpack.c.bf16 %v580_v61, %v579_v59  ;;  %v592_v30 = vld [vmem:[%s1552_s8 + $0x28] sm:$0xff]  ;;  %v591_v49 = vld [vmem:[%s1552_s8 + $0x20] sm:$0xff]  ;;  %v593_v59 = vld [vmem:[%s1552_s8 + $0x30] sm:$0xff] }
 0x188   :  { %v817_v6 = vpop.f32.mrb[2].mxu0  ;;  %832 = vmatprep.mubr.msk.f32.mxu1 %vm336_vm2, %v271_v63  ;;  %v1045_v63 = vpop.permute.xlu0 %1044 }
 0x189   :  { %v280_v9 = vpop.f32.mrb[3].mxu0  ;;  %833 = vmatmul.mubr.msk.f32.vlgmr.msra.gmra.mrb[0].mxu1 %vm336_vm2, %v276_v2  ;;  %v286_v42 = vadd.f32 %v817_v6, %v199_v5  ;;  %v582_v2 = vsel %vm530_vm3, %v542_v43, %v1042_v51  ;;  %v1046_v5 = vunpack.i.l.bf16 %v1045_v63  ;;  %v590_v43 = vld [vmem:[%s1552_s8 + $0x18] sm:$0xff] }
 0x18a   :  { %v281_v10 = vadd.f32 %v280_v9, %v198_v4  ;;  %931 = vmatpush3.bf16.msra.mxu1 %v928_v7  ;;  %v1047_v4 = vunpack.i.h.bf16 %v1045_v63  ;;  %v948_v6 = vpack.c.bf16 %v582_v2, %v581_v54 }
 0x18b   :  { %933 = vmatprep.subr.bf16.mxu1 %v932_v21  ;;  %v583_v34 = vsel %vm530_vm3, %v543_v58, %v1046_v5  ;;  %v594_v58 = vld [vmem:[%s1552_s8 + $0x38] sm:$0xff] }
 0x18c   :  { %v820_v1 = vpop.f32.mrb[4].mxu0  ;;  %835 = vmatprep.mubr.msk.f32.mxu1 %vm336_vm2, %v281_v10  ;;  %v584_v33 = vsel %vm530_vm3, %v544_v14, %v1047_v4  ;;  %v1050_v10 = vpop.permute.xlu1 %1049 }
 0x18d   :  { %v290_v53 = vpop.f32.mrb[5].mxu0  ;;  %836 = vmatmul.mubr.msk.f32.gmra.mrb[2].mxu1 %vm336_vm2, %v286_v42  ;;  %v296_v16 = vadd.f32 %v820_v1, %v201_v0  ;;  %v952_v9 = vpack.c.bf16 %v584_v33, %v583_v34  ;;  %v546_v42 = vsub.f32 0.0, %v1361_v37  ;;  %v1052_v44 = vunpack.i.h.bf16 %v1050_v10  ;;  %v467_v37 = vld [vmem:[%s1551_s9 + $0x8] sm:$0xff] }
 0x18e   :  { %v291_v3 = vadd.f32 %v290_v53, %v200_v11  ;;  %935 = vmatpush3.bf16.msra.mxu1 %v932_v21  ;;  %v545_v11 = vsub.f32 0.0, %v1356_v36  ;;  %v1051_v0 = vunpack.i.l.bf16 %v1050_v10 }
 0x18f   :  { %937 = vmatprep.subr.bf16.mxu1 %v936_v18  ;;  %v586_v47 = vsel %vm530_vm3, %v546_v42, %v1052_v44 }
 0x190   :  { %v823_v24 = vpop.f32.mrb[6].mxu0  ;;  %838 = vmatprep.mubr.msk.f32.mxu1 %vm336_vm2, %v291_v3  ;;  %v585_v1 = vsel %vm530_vm3, %v545_v11, %v1051_v0  ;;  %v468_v3 = vld [vmem:[%s1551_s9 + $0x10] sm:$0xff] }
 0x191   :  { %v300_v27 = vpop.f32.mrb[7].mxu0  ;;  %839 = vmatmul.mubr.msk.f32.gmra.mrb[4].mxu1 %vm336_vm2, %v296_v16  ;;  %v306_v41 = vadd.f32 %v823_v24, %v203_v23  ;;  %v956_v50 = vpack.c.bf16 %v586_v47, %v585_v1 }
 0x192   :  { %v301_v35 = vadd.f32 %v300_v27, %v202_v17  ;;  %939 = vmatpush3.bf16.msra.mxu1 %v936_v18 }
 0x193   :  { %941 = vmatprep.subr.bf16.mxu1 %v940_v62 }
 0x194   :  { %841 = vmatprep.mubr.msk.f32.mxu1 %vm336_vm2, %v301_v35  ;;  %v587_v35 = vld [vmem:[%s1552_s8] sm:$0xff] }
 0x195   :  { %842 = vmatmul.mubr.msk.f32.gmra.mrb[6].mxu1 %vm336_vm2, %v306_v41 }
 0x196   :  { %943 = vmatpush3.bf16.msra.mxu1 %v940_v62 }
 0x197   :  { %945 = vmatprep.subr.bf16.mxu1 %v944_v52 }
 0x19a   :  { %947 = vmatpush3.bf16.msra.mxu1 %v944_v52 }
 0x19b   :  { %949 = vmatprep.subr.bf16.mxu1 %v948_v6 }
 0x19e   :  { %951 = vmatpush3.bf16.msra.mxu1 %v948_v6 }
 0x19f   :  { %953 = vmatprep.subr.bf16.mxu1 %v952_v9 }
 0x1a2   :  { %955 = vmatpush3.bf16.msra.mxu1 %v952_v9 }
 0x1a3   :  { %957 = vmatprep.subr.bf16.mxu1 %v956_v50 }
 0x1a6   :  { %959 = vmatpush3.bf16.msra.mxu1 %v956_v50 }
 0x25c   :  { %v834_v53 = vpop.f32.mrb[0].mxu1 }
 0x25d   :  { %v427_v57 = vpop.f32.mrb[1].mxu1  ;;  %v475_v60 = vmul.f32 %v834_v53, %v467_v37 }
 0x25e   :  { %v474_v36 = vmul.f32 %v466_v12, %v427_v57 }
 0x260   :  { %v837_v13 = vpop.f32.mrb[2].mxu1  ;;  %876 = vmatprep.mubr.f32.mxu1 %v474_v36 }
 0x261   :  { %v437_v16 = vpop.f32.mrb[3].mxu1  ;;  %877 = vmatmul.mubr.f32.vlgmr.msra.gmra.mrb[8].mxu1 %v475_v60  ;;  %v477_v7 = vmul.f32 %v837_v13, %v469_v15 }
 0x262   :  { %v476_v17 = vmul.f32 %v468_v3, %v437_v16 }
 0x264   :  { %v840_v20 = vpop.f32.mrb[4].mxu1  ;;  %879 = vmatprep.mubr.f32.mxu1 %v476_v17 }
 0x265   :  { %v447_v23 = vpop.f32.mrb[5].mxu1  ;;  %880 = vmatmul.mubr.f32.gmra.mrb[10].mxu1 %v477_v7  ;;  %v479_v19 = vmul.f32 %v840_v20, %v471_v22 }
 0x266   :  { %v478_v24 = vmul.f32 %v470_v8, %v447_v23 }
 0x268   :  { %v843_v21 = vpop.f32.mrb[6].mxu1  ;;  %882 = vmatprep.mubr.f32.mxu1 %v478_v24 }
 0x269   :  { %v457_v27 = vpop.f32.mrb[7].mxu1  ;;  %883 = vmatmul.mubr.f32.gmra.mrb[12].mxu1 %v479_v19  ;;  %v481_v29 = vmul.f32 %v843_v21, %v473_v26 }
 0x26a   :  { %v480_v28 = vmul.f32 %v472_v25, %v457_v27 }
 0x26c   :  { %885 = vmatprep.mubr.f32.mxu1 %v480_v28 }
 0x26d   :  { %886 = vmatmul.mubr.f32.gmra.mrb[14].mxu1 %v481_v29 }
 0x334   :  { %v878_v38 = vpop.f32.mrb[8].mxu1 }
 0x335   :  { %v667_v39 = vadd.f32 %v878_v38, %v588_v31  ;;  %v661_v40 = vpop.f32.mrb[9].mxu1 }
 0x336   :  { %v662_v41 = vadd.f32 %v661_v40, %v587_v35 }
 0x337   :  { %701 = vst.msk [vmem:[%s1553_s10 + $0x8] sm:$0xff] %vm139_vm0, %v667_v39 }
 0x338   :  { %700 = vst.msk [vmem:[%s1553_s10] sm:$0xff] %vm139_vm0, %v662_v41  ;;  %v881_v18 = vpop.f32.mrb[10].mxu1 }
 0x339   :  { %v677_v46 = vadd.f32 %v881_v18, %v590_v43  ;;  %v671_v48 = vpop.f32.mrb[11].mxu1 }
 0x33a   :  { %v672_v55 = vadd.f32 %v671_v48, %v589_v45 }
 0x33b   :  { %703 = vst.msk [vmem:[%s1553_s10 + $0x18] sm:$0xff] %vm139_vm0, %v677_v46 }
 0x33c   :  { %702 = vst.msk [vmem:[%s1553_s10 + $0x10] sm:$0xff] %vm139_vm0, %v672_v55  ;;  %v884_v56 = vpop.f32.mrb[12].mxu1 }
 0x33d   :  { %v687_v51 = vadd.f32 %v884_v56, %v592_v30  ;;  %v681_v32 = vpop.f32.mrb[13].mxu1 }
 0x33e   :  { %v682_v14 = vadd.f32 %v681_v32, %v591_v49 }
 0x33f   :  { %705 = vst.msk [vmem:[%s1553_s10 + $0x28] sm:$0xff] %vm139_vm0, %v687_v51 }
 0x340   :  { %704 = vst.msk [vmem:[%s1553_s10 + $0x20] sm:$0xff] %vm139_vm0, %v682_v14  ;;  %v887_v61 = vpop.f32.mrb[14].mxu1 }
 0x341   :  { %v697_v62 = vadd.f32 %v887_v61, %v594_v58  ;;  %v691_v52 = vpop.f32.mrb[15].mxu1 }
 0x342   :  { %v692_v63 = vadd.f32 %v691_v52, %v593_v59 }
 0x343   :  { %707 = vst.msk [vmem:[%s1553_s10 + $0x38] sm:$0xff] %vm139_vm0, %v697_v62 }
 0x344   :  { %706 = vst.msk [vmem:[%s1553_s10 + $0x30] sm:$0xff] %vm139_vm0, %v692_v63 }

</bundles_post_ra>
